<compile_context>
chip_gen: v5e
topology: v5e:2x2
jax: 0.10.0
libtpu: 0.0.40
codegen_flags: <defaults>
</compile_context>

<pallas_src>
import functools

import jax
import jax.numpy as jnp
from jax import lax
from jax.experimental import pallas as pl
from jax.experimental.pallas import tpu as pltpu


# -----------------------------------------------------------------------------
# Fused kernel: folded-BN depthwise 3x3 + pre_mlp_skip + channel MLP + skip.
# One grid step per batch element; everything kept as (features, HW) in VMEM.
# -----------------------------------------------------------------------------
def _lpu_fused_kernel(x_ref, masks_ref, taps_s_ref, taps_r_ref, bias0_ref, dw_shift_ref,
                      wcat_ref, bcat_ref, w2t_ref, b2_ref, o_ref,
                      *, W, HW, hidden, has_skip):
    x = x_ref[0]                      # (Cin, HW) f32, HW on the lane axis
    masks = masks_ref[...]            # (9, HW)   f32 {0,1} border-validity masks
    taps_s = taps_s_ref[...]          # (Cin, 9)  dw weights * dw BN scale (+pre scale @ centre)
    taps_r = taps_r_ref[...]          # (Cin, 9)  raw dw weights (for exact BN-shift term)

    # ---- x_updated = DWConv3x3(BN(x)) + dw_bias + BN_pre(x), all folded ------------
    # Exact dw-BN shift contribution under zero padding:
    #   dw_shift_c * sum_k dw_w[k,c] * mask_k(p)  -> tiny MXU matmul over the 9 taps.
    acc = bias0_ref[...] + dw_shift_ref[...] * jnp.dot(
        taps_r, masks, preferred_element_type=jnp.float32)
    acc = acc + taps_s[:, 4:5] * x            # centre tap (includes pre_mlp_skip scale)

    k = 0
    for dy in (-1, 0, 1):
        for dx in (-1, 0, 1):
            if dy == 0 and dx == 0:
                k += 1
                continue
            # lane p must read flat index p + dy*W + dx  ->  roll by the negative.
            shift = (-(dy * W + dx)) % HW
            shifted = pltpu.roll(x, shift, axis=1)
            acc = acc + taps_s[:, k:k + 1] * (shifted * masks[k:k + 1, :])
            k += 1

    # ---- channel MLP + skip, features-major so HW stays lane-dense ------------------
    z = jnp.dot(wcat_ref[...], acc, preferred_element_type=jnp.float32) + bcat_ref[...]
    if has_skip:
        h = jnp.maximum(z[:hidden, :], 0.0)   # ChannelMlp hidden
        skip = z[hidden:, :]                  # folded-BN 1x1 skip_transform
    else:
        h = jnp.maximum(z, 0.0)
        skip = acc                            # identity skip (Cin == Cout)
    out = jnp.dot(w2t_ref[...], h, preferred_element_type=jnp.float32) + b2_ref[...] + skip
    o_ref[0] = out.astype(o_ref.dtype)


def _tap_masks(H, W):
    """(9, H*W) f32 {0,1}: mask_k(p) = 1 iff 3x3 tap k reads inside the image at pixel p."""
    hh = jnp.arange(H)[:, None]
    ww = jnp.arange(W)[None, :]
    rows = []
    for dy in (-1, 0, 1):
        for dx in (-1, 0, 1):
            valid = (hh + dy >= 0) & (hh + dy < H) & (ww + dx >= 0) & (ww + dx < W)
            rows.append(valid.reshape(-1))
    return jnp.stack(rows).astype(jnp.float32)


# -----------------------------------------------------------------------------
# Wrapper: NCHW in / NCHW out (only free reshapes, no transposes).
# -----------------------------------------------------------------------------
def lpu_block_forward(x_nchw, params):
    B, Cin, H, W = x_nchw.shape
    HW = H * W
    hidden = params['w1'].shape[1]
    Cout = params['w2'].shape[1]
    has_skip = params.get('skip_w') is not None

    x = x_nchw.reshape(B, Cin, HW).astype(jnp.float32)   # channels-first, HW on lanes

    # ---- host-side parameter folding (tiny tensors) ---------------------------------
    dw_w9 = params['dw_w'].reshape(9, Cin)                # tap-major, k = (dy+1)*3+(dx+1)
    taps_r = dw_w9.T                                      # (Cin, 9) raw weights
    taps_s = (dw_w9 * params['dw_scale'][None, :]).T      # (Cin, 9) BN-scale folded
    taps_s = taps_s.at[:, 4].add(params['pre_scale'])     # fold pre_mlp_skip scale (centre tap)
    bias0 = (params['dw_b'] + params['pre_shift']).reshape(Cin, 1)
    dw_shift = params['dw_shift'].reshape(Cin, 1)

    if has_skip:
        sw = params['skip_w'] * params['skip_scale'][:, None]             # fold skip BN scale
        sb = params['skip_shift'] @ params['skip_w'] + params['skip_b']   # fold skip BN shift
        wcat = jnp.concatenate([params['w1'], sw], axis=1).T              # (hidden+Cout, Cin)
        bcat = jnp.concatenate([params['b1'], sb]).reshape(-1, 1)
    else:
        wcat = params['w1'].T                                             # (hidden, Cin)
        bcat = params['b1'].reshape(-1, 1)
    Kcat = wcat.shape[0]
    w2t = params['w2'].T                                                  # (Cout, hidden)
    b2 = params['b2'].reshape(Cout, 1)

    masks = _tap_masks(H, W)                                              # (9, HW)

    kern = functools.partial(_lpu_fused_kernel, W=W, HW=HW, hidden=hidden,
                             has_skip=has_skip)

    def full(*shape):
        return pl.BlockSpec(shape, lambda b, _n=len(shape): (0,) * _n)

    flops = B * HW * (27 * Cin + 2 * 9 * Cin + 2 * Kcat * Cin + 2 * Cout * hidden
                      + Kcat + 2 * Cout)
    bytes_accessed = 4 * (B * Cin * HW + B * Cout * HW + 9 * HW
                          + 2 * Cin * 9 + 2 * Cin + Kcat * (Cin + 1) + Cout * (hidden + 1))

    out_flat = pl.pallas_call(
        kern,
        out_shape=jax.ShapeDtypeStruct((B, Cout, HW), jnp.float32),
        grid_spec=pltpu.PrefetchScalarGridSpec(
            num_scalar_prefetch=0,
            grid=(B,),
            in_specs=[
                pl.BlockSpec((1, Cin, HW), lambda b: (b, 0, 0)),   # x (per-batch block)
                full(9, HW),                                        # border masks
                full(Cin, 9),                                       # scale-folded dw taps
                full(Cin, 9),                                       # raw dw taps
                full(Cin, 1),                                       # dw_b + pre_shift
                full(Cin, 1),                                       # dw BN shift
                full(Kcat, Cin),                                    # [w1 | folded skip_w]^T
                full(Kcat, 1),                                      # [b1 | folded skip_b]
                full(Cout, hidden),                                 # w2^T
                full(Cout, 1),                                      # b2
            ],
            out_specs=pl.BlockSpec((1, Cout, HW), lambda b: (b, 0, 0)),
        ),
        compiler_params=pltpu.CompilerParams(dimension_semantics=("parallel",)),
        cost_estimate=pl.CostEstimate(flops=int(flops), transcendentals=0,
                                      bytes_accessed=int(bytes_accessed)),
    )(x, masks, taps_s, taps_r, bias0, dw_shift, wcat, bcat, w2t, b2)

    return out_flat.reshape(B, Cout, H, W)                # free reshape back to NCHW


# -----------------------------------------------------------------------------
# Deterministic parameter init (shapes follow the module's __init__)
# -----------------------------------------------------------------------------
def init_params(key, channels_in, channels_out, channel_multiplier=2, eps=1e-5):
    hidden = channel_multiplier * channels_in
    keys = iter(jax.random.split(key, 24))

    def bn_fold(c):
        gamma = jax.random.uniform(next(keys), (c,), jnp.float32, 0.5, 1.5)
        beta = 0.1 * jax.random.normal(next(keys), (c,), jnp.float32)
        rmean = 0.1 * jax.random.normal(next(keys), (c,), jnp.float32)
        rvar = jax.random.uniform(next(keys), (c,), jnp.float32, 0.5, 1.5)
        scale = gamma / jnp.sqrt(rvar + eps)
        shift = beta - rmean * scale
        return scale, shift

    p = {}
    p['pre_scale'], p['pre_shift'] = bn_fold(channels_in)          # pre_mlp_skip BN
    p['dw_scale'], p['dw_shift'] = bn_fold(channels_in)            # dw_conv BN
    p['dw_w'] = 0.2 * jax.random.normal(next(keys), (3, 3, channels_in), jnp.float32)
    p['dw_b'] = 0.1 * jax.random.normal(next(keys), (channels_in,), jnp.float32)
    p['w1'] = 0.2 * jax.random.normal(next(keys), (channels_in, hidden), jnp.float32)
    p['b1'] = 0.1 * jax.random.normal(next(keys), (hidden,), jnp.float32)
    p['w2'] = 0.2 * jax.random.normal(next(keys), (hidden, channels_out), jnp.float32)
    p['b2'] = 0.1 * jax.random.normal(next(keys), (channels_out,), jnp.float32)
    if channels_in != channels_out:
        p['skip_scale'], p['skip_shift'] = bn_fold(channels_in)    # skip_transform BN
        p['skip_w'] = 0.2 * jax.random.normal(next(keys), (channels_in, channels_out), jnp.float32)
        p['skip_b'] = 0.1 * jax.random.normal(next(keys), (channels_out,), jnp.float32)
    else:
        p['skip_w'] = None
    return p


# -----------------------------------------------------------------------------
# Pure-JAX reference (same math, NCHW in / NCHW out) used for verification
# -----------------------------------------------------------------------------
def lpu_block_reference(x_nchw, params):
    x = jnp.transpose(x_nchw, (0, 2, 3, 1)).astype(jnp.float32)   # NHWC
    Cin = x.shape[-1]
    bn_dw = x * params['dw_scale'] + params['dw_shift']
    rhs = params['dw_w'][:, :, None, :]                           # (3,3,1,Cin) HWIO
    dw = lax.conv_general_dilated(
        bn_dw, rhs, window_strides=(1, 1), padding='SAME',
        dimension_numbers=('NHWC', 'HWIO', 'NHWC'),
        feature_group_count=Cin) + params['dw_b']
    x_up = dw + (x * params['pre_scale'] + params['pre_shift'])
    h = jax.nn.relu(jnp.einsum('nhwc,cd->nhwd', x_up, params['w1']) + params['b1'])
    mlp = jnp.einsum('nhwc,cd->nhwd', h, params['w2']) + params['b2']
    if params.get('skip_w') is not None:
        bns = x_up * params['skip_scale'] + params['skip_shift']
        skip = jnp.einsum('nhwc,cd->nhwd', bns, params['skip_w']) + params['skip_b']
    else:
        skip = x_up
    out = mlp + skip
    return jnp.transpose(out, (0, 3, 1, 2))


if __name__ == "__main__":
    key = jax.random.PRNGKey(0)
    kx, kp1, kp2 = jax.random.split(key, 3)

    B, Cin, Cout, H, W = 2, 4, 8, 16, 16
    x = jax.random.normal(kx, (B, Cin, H, W), jnp.float32)        # NCHW, like PyTorch

    # channels_in != channels_out -> skip_transform path
    params = init_params(kp1, Cin, Cout)
    out = jax.block_until_ready(lpu_block_forward(x, params))
    ref = lpu_block_reference(x, params)
    assert out.shape == (B, Cout, H, W), out.shape
    assert jnp.allclose(out, ref, atol=1e-4, rtol=1e-4), float(jnp.max(jnp.abs(out - ref)))

    # channels_in == channels_out -> identity skip path
    params_id = init_params(kp2, Cin, Cin)
    out_id = jax.block_until_ready(lpu_block_forward(x, params_id))
    ref_id = lpu_block_reference(x, params_id)
    assert out_id.shape == (B, Cin, H, W), out_id.shape
    assert jnp.allclose(out_id, ref_id, atol=1e-4, rtol=1e-4), float(jnp.max(jnp.abs(out_id - ref_id)))

    print("KERNEL_OK")
</pallas_src>

<mosaic_0001>
module attributes {stable_mosaic.version = 11 : i64} {
  func.func @_lpu_fused_kernel(%arg0: i32, %arg1: memref<1x4x256xf32, #tpu.memory_space<vmem>>, %arg2: memref<9x256xf32, #tpu.memory_space<vmem>>, %arg3: memref<4x9xf32, #tpu.memory_space<vmem>>, %arg4: memref<4x9xf32, #tpu.memory_space<vmem>>, %arg5: memref<4x1xf32, #tpu.memory_space<vmem>>, %arg6: memref<4x1xf32, #tpu.memory_space<vmem>>, %arg7: memref<16x4xf32, #tpu.memory_space<vmem>>, %arg8: memref<16x1xf32, #tpu.memory_space<vmem>>, %arg9: memref<8x8xf32, #tpu.memory_space<vmem>>, %arg10: memref<8x1xf32, #tpu.memory_space<vmem>>, %arg11: memref<1x8x256xf32, #tpu.memory_space<vmem>>) attributes {dimension_semantics = [#tpu.dimension_semantics<parallel>], iteration_bounds = array<i64: 2>, scalar_prefetch = 0 : i64, scratch_operands = 0 : i64, tpu.core_type = #tpu.core_type<tc>, window_params = [{transform_indices = @transform_0, window_bounds = array<i64: 1, 4, 256>}, {pipeline_mode = #tpu.pipeline_mode<synchronous>, transform_indices = @transform_1, window_bounds = array<i64: 9, 256>}, {pipeline_mode = #tpu.pipeline_mode<synchronous>, transform_indices = @transform_2, window_bounds = array<i64: 4, 9>}, {pipeline_mode = #tpu.pipeline_mode<synchronous>, transform_indices = @transform_3, window_bounds = array<i64: 4, 9>}, {pipeline_mode = #tpu.pipeline_mode<synchronous>, transform_indices = @transform_4, window_bounds = array<i64: 4, 1>}, {pipeline_mode = #tpu.pipeline_mode<synchronous>, transform_indices = @transform_5, window_bounds = array<i64: 4, 1>}, {pipeline_mode = #tpu.pipeline_mode<synchronous>, transform_indices = @transform_6, window_bounds = array<i64: 16, 4>}, {pipeline_mode = #tpu.pipeline_mode<synchronous>, transform_indices = @transform_7, window_bounds = array<i64: 16, 1>}, {pipeline_mode = #tpu.pipeline_mode<synchronous>, transform_indices = @transform_8, window_bounds = array<i64: 8, 8>}, {pipeline_mode = #tpu.pipeline_mode<synchronous>, transform_indices = @transform_9, window_bounds = array<i64: 8, 1>}, {transform_indices = @transform_10, window_bounds = array<i64: 1, 8, 256>}]} {
    %c0 = arith.constant 0 : index
    %c0_0 = arith.constant 0 : index
    %c0_1 = arith.constant 0 : index
    %0 = vector.load %arg1[%c0, %c0_0, %c0_1] : memref<1x4x256xf32, #tpu.memory_space<vmem>>, vector<1x4x256xf32>
    %1 = vector.shape_cast %0 : vector<1x4x256xf32> to vector<4x256xf32>
    %c0_2 = arith.constant 0 : index
    %c0_3 = arith.constant 0 : index
    %2 = vector.load %arg2[%c0_2, %c0_3] : memref<9x256xf32, #tpu.memory_space<vmem>>, vector<9x256xf32>
    %c0_4 = arith.constant 0 : index
    %c0_5 = arith.constant 0 : index
    %3 = vector.load %arg3[%c0_4, %c0_5] : memref<4x9xf32, #tpu.memory_space<vmem>>, vector<4x9xf32>
    %c0_6 = arith.constant 0 : index
    %c0_7 = arith.constant 0 : index
    %4 = vector.load %arg4[%c0_6, %c0_7] : memref<4x9xf32, #tpu.memory_space<vmem>>, vector<4x9xf32>
    %c0_8 = arith.constant 0 : index
    %c0_9 = arith.constant 0 : index
    %5 = vector.load %arg5[%c0_8, %c0_9] : memref<4x1xf32, #tpu.memory_space<vmem>>, vector<4x1xf32>
    %c0_10 = arith.constant 0 : index
    %c0_11 = arith.constant 0 : index
    %6 = vector.load %arg6[%c0_10, %c0_11] : memref<4x1xf32, #tpu.memory_space<vmem>>, vector<4x1xf32>
    %cst = arith.constant dense<0.000000e+00> : vector<4x256xf32>
    %7 = tpu.matmul %4, %2, %cst {dimension_numbers = #tpu.dot_dimension_numbers<[1], [0], [0], [1], [0, 0, 1, 1], [], []>} : vector<4x9xf32>, vector<9x256xf32>, vector<4x256xf32> -> vector<4x256xf32>
    %8 = vector.broadcast %6 : vector<4x1xf32> to vector<4x256xf32>
    %9 = arith.mulf %8, %7 : vector<4x256xf32>
    %10 = vector.broadcast %5 : vector<4x1xf32> to vector<4x256xf32>
    %11 = arith.addf %10, %9 : vector<4x256xf32>
    %12 = vector.extract_strided_slice %3 {offsets = [0, 4], sizes = [4, 1], strides = [1, 1]} : vector<4x9xf32> to vector<4x1xf32>
    %13 = vector.broadcast %12 : vector<4x1xf32> to vector<4x256xf32>
    %14 = arith.mulf %13, %1 : vector<4x256xf32>
    %15 = arith.addf %11, %14 : vector<4x256xf32>
    %c17_i32 = arith.constant 17 : i32
    %16 = tpu.dynamic_rotate %1 by %c17_i32 dim 1 : vector<4x256xf32>, i32 -> vector<4x256xf32>
    %17 = vector.extract_strided_slice %3 {offsets = [0, 0], sizes = [4, 1], strides = [1, 1]} : vector<4x9xf32> to vector<4x1xf32>
    %18 = vector.extract_strided_slice %2 {offsets = [0, 0], sizes = [1, 256], strides = [1, 1]} : vector<9x256xf32> to vector<1x256xf32>
    %19 = vector.broadcast %18 : vector<1x256xf32> to vector<4x256xf32>
    %20 = arith.mulf %16, %19 : vector<4x256xf32>
    %21 = vector.broadcast %17 : vector<4x1xf32> to vector<4x256xf32>
    %22 = arith.mulf %21, %20 : vector<4x256xf32>
    %23 = arith.addf %15, %22 : vector<4x256xf32>
    %c16_i32 = arith.constant 16 : i32
    %24 = tpu.dynamic_rotate %1 by %c16_i32 dim 1 : vector<4x256xf32>, i32 -> vector<4x256xf32>
    %25 = vector.extract_strided_slice %3 {offsets = [0, 1], sizes = [4, 1], strides = [1, 1]} : vector<4x9xf32> to vector<4x1xf32>
    %26 = vector.extract_strided_slice %2 {offsets = [1, 0], sizes = [1, 256], strides = [1, 1]} : vector<9x256xf32> to vector<1x256xf32>
    %27 = vector.broadcast %26 : vector<1x256xf32> to vector<4x256xf32>
    %28 = arith.mulf %24, %27 : vector<4x256xf32>
    %29 = vector.broadcast %25 : vector<4x1xf32> to vector<4x256xf32>
    %30 = arith.mulf %29, %28 : vector<4x256xf32>
    %31 = arith.addf %23, %30 : vector<4x256xf32>
    %c15_i32 = arith.constant 15 : i32
    %32 = tpu.dynamic_rotate %1 by %c15_i32 dim 1 : vector<4x256xf32>, i32 -> vector<4x256xf32>
    %33 = vector.extract_strided_slice %3 {offsets = [0, 2], sizes = [4, 1], strides = [1, 1]} : vector<4x9xf32> to vector<4x1xf32>
    %34 = vector.extract_strided_slice %2 {offsets = [2, 0], sizes = [1, 256], strides = [1, 1]} : vector<9x256xf32> to vector<1x256xf32>
    %35 = vector.broadcast %34 : vector<1x256xf32> to vector<4x256xf32>
    %36 = arith.mulf %32, %35 : vector<4x256xf32>
    %37 = vector.broadcast %33 : vector<4x1xf32> to vector<4x256xf32>
    %38 = arith.mulf %37, %36 : vector<4x256xf32>
    %39 = arith.addf %31, %38 : vector<4x256xf32>
    %c1_i32 = arith.constant 1 : i32
    %40 = tpu.dynamic_rotate %1 by %c1_i32 dim 1 : vector<4x256xf32>, i32 -> vector<4x256xf32>
    %41 = vector.extract_strided_slice %3 {offsets = [0, 3], sizes = [4, 1], strides = [1, 1]} : vector<4x9xf32> to vector<4x1xf32>
    %42 = vector.extract_strided_slice %2 {offsets = [3, 0], sizes = [1, 256], strides = [1, 1]} : vector<9x256xf32> to vector<1x256xf32>
    %43 = vector.broadcast %42 : vector<1x256xf32> to vector<4x256xf32>
    %44 = arith.mulf %40, %43 : vector<4x256xf32>
    %45 = vector.broadcast %41 : vector<4x1xf32> to vector<4x256xf32>
    %46 = arith.mulf %45, %44 : vector<4x256xf32>
    %47 = arith.addf %39, %46 : vector<4x256xf32>
    %c255_i32 = arith.constant 255 : i32
    %48 = tpu.dynamic_rotate %1 by %c255_i32 dim 1 : vector<4x256xf32>, i32 -> vector<4x256xf32>
    %49 = vector.extract_strided_slice %3 {offsets = [0, 5], sizes = [4, 1], strides = [1, 1]} : vector<4x9xf32> to vector<4x1xf32>
    %50 = vector.extract_strided_slice %2 {offsets = [5, 0], sizes = [1, 256], strides = [1, 1]} : vector<9x256xf32> to vector<1x256xf32>
    %51 = vector.broadcast %50 : vector<1x256xf32> to vector<4x256xf32>
    %52 = arith.mulf %48, %51 : vector<4x256xf32>
    %53 = vector.broadcast %49 : vector<4x1xf32> to vector<4x256xf32>
    %54 = arith.mulf %53, %52 : vector<4x256xf32>
    %55 = arith.addf %47, %54 : vector<4x256xf32>
    %c241_i32 = arith.constant 241 : i32
    %56 = tpu.dynamic_rotate %1 by %c241_i32 dim 1 : vector<4x256xf32>, i32 -> vector<4x256xf32>
    %57 = vector.extract_strided_slice %3 {offsets = [0, 6], sizes = [4, 1], strides = [1, 1]} : vector<4x9xf32> to vector<4x1xf32>
    %58 = vector.extract_strided_slice %2 {offsets = [6, 0], sizes = [1, 256], strides = [1, 1]} : vector<9x256xf32> to vector<1x256xf32>
    %59 = vector.broadcast %58 : vector<1x256xf32> to vector<4x256xf32>
    %60 = arith.mulf %56, %59 : vector<4x256xf32>
    %61 = vector.broadcast %57 : vector<4x1xf32> to vector<4x256xf32>
    %62 = arith.mulf %61, %60 : vector<4x256xf32>
    %63 = arith.addf %55, %62 : vector<4x256xf32>
    %c240_i32 = arith.constant 240 : i32
    %64 = tpu.dynamic_rotate %1 by %c240_i32 dim 1 : vector<4x256xf32>, i32 -> vector<4x256xf32>
    %65 = vector.extract_strided_slice %3 {offsets = [0, 7], sizes = [4, 1], strides = [1, 1]} : vector<4x9xf32> to vector<4x1xf32>
    %66 = vector.extract_strided_slice %2 {offsets = [7, 0], sizes = [1, 256], strides = [1, 1]} : vector<9x256xf32> to vector<1x256xf32>
    %67 = vector.broadcast %66 : vector<1x256xf32> to vector<4x256xf32>
    %68 = arith.mulf %64, %67 : vector<4x256xf32>
    %69 = vector.broadcast %65 : vector<4x1xf32> to vector<4x256xf32>
    %70 = arith.mulf %69, %68 : vector<4x256xf32>
    %71 = arith.addf %63, %70 : vector<4x256xf32>
    %c239_i32 = arith.constant 239 : i32
    %72 = tpu.dynamic_rotate %1 by %c239_i32 dim 1 : vector<4x256xf32>, i32 -> vector<4x256xf32>
    %73 = vector.extract_strided_slice %3 {offsets = [0, 8], sizes = [4, 1], strides = [1, 1]} : vector<4x9xf32> to vector<4x1xf32>
    %74 = vector.extract_strided_slice %2 {offsets = [8, 0], sizes = [1, 256], strides = [1, 1]} : vector<9x256xf32> to vector<1x256xf32>
    %75 = vector.broadcast %74 : vector<1x256xf32> to vector<4x256xf32>
    %76 = arith.mulf %72, %75 : vector<4x256xf32>
    %77 = vector.broadcast %73 : vector<4x1xf32> to vector<4x256xf32>
    %78 = arith.mulf %77, %76 : vector<4x256xf32>
    %79 = arith.addf %71, %78 : vector<4x256xf32>
    %c0_12 = arith.constant 0 : index
    %c0_13 = arith.constant 0 : index
    %80 = vector.load %arg7[%c0_12, %c0_13] : memref<16x4xf32, #tpu.memory_space<vmem>>, vector<16x4xf32>
    %cst_14 = arith.constant dense<0.000000e+00> : vector<16x256xf32>
    %81 = tpu.matmul %80, %79, %cst_14 {dimension_numbers = #tpu.dot_dimension_numbers<[1], [0], [0], [1], [0, 0, 1, 1], [], []>} : vector<16x4xf32>, vector<4x256xf32>, vector<16x256xf32> -> vector<16x256xf32>
    %c0_15 = arith.constant 0 : index
    %c0_16 = arith.constant 0 : index
    %82 = vector.load %arg8[%c0_15, %c0_16] : memref<16x1xf32, #tpu.memory_space<vmem>>, vector<16x1xf32>
    %83 = vector.broadcast %82 : vector<16x1xf32> to vector<16x256xf32>
    %84 = arith.addf %81, %83 : vector<16x256xf32>
    %85 = vector.extract_strided_slice %84 {offsets = [0, 0], sizes = [8, 256], strides = [1, 1]} : vector<16x256xf32> to vector<8x256xf32>
    %cst_17 = arith.constant 0.000000e+00 : f32
    %86 = vector.broadcast %cst_17 : f32 to vector<8x256xf32>
    %87 = arith.maximumf %85, %86 : vector<8x256xf32>
    %88 = vector.extract_strided_slice %84 {offsets = [8, 0], sizes = [8, 256], strides = [1, 1]} : vector<16x256xf32> to vector<8x256xf32>
    %c0_18 = arith.constant 0 : index
    %c0_19 = arith.constant 0 : index
    %89 = vector.load %arg9[%c0_18, %c0_19] : memref<8x8xf32, #tpu.memory_space<vmem>>, vector<8x8xf32>
    %cst_20 = arith.constant dense<0.000000e+00> : vector<8x256xf32>
    %90 = tpu.matmul %89, %87, %cst_20 {dimension_numbers = #tpu.dot_dimension_numbers<[1], [0], [0], [1], [0, 0, 1, 1], [], []>} : vector<8x8xf32>, vector<8x256xf32>, vector<8x256xf32> -> vector<8x256xf32>
    %c0_21 = arith.constant 0 : index
    %c0_22 = arith.constant 0 : index
    %91 = vector.load %arg10[%c0_21, %c0_22] : memref<8x1xf32, #tpu.memory_space<vmem>>, vector<8x1xf32>
    %92 = vector.broadcast %91 : vector<8x1xf32> to vector<8x256xf32>
    %93 = arith.addf %90, %92 : vector<8x256xf32>
    %94 = arith.addf %93, %88 : vector<8x256xf32>
    %c0_23 = arith.constant 0 : index
    %c0_24 = arith.constant 0 : index
    %c0_25 = arith.constant 0 : index
    %95 = vector.load %arg11[%c0_23, %c0_24, %c0_25] : memref<1x8x256xf32, #tpu.memory_space<vmem>>, vector<1x8x256xf32>
    %96 = vector.shape_cast %95 : vector<1x8x256xf32> to vector<8x256xf32>
    %97 = vector.shape_cast %94 : vector<8x256xf32> to vector<1x8x256xf32>
    tpu.vector_store %arg11[%c0_23, %c0_24, %c0_25], %97 {strides = array<i32>} : memref<1x8x256xf32, #tpu.memory_space<vmem>>, vector<1x8x256xf32>,
    return
  }
  func.func @transform_0(%arg0: i32) -> (i32, i32, i32) {
    %c0_i32 = arith.constant 0 : i32
    %c0_i32_0 = arith.constant 0 : i32
    %c0_i32_1 = arith.constant 0 : i32
    return %arg0, %c0_i32, %c0_i32_0 : i32, i32, i32
  }
  func.func @transform_1(%arg0: i32) -> (i32, i32) {
    %c0_i32 = arith.constant 0 : i32
    %c0_i32_0 = arith.constant 0 : i32
    %c0_i32_1 = arith.constant 0 : i32
    return %c0_i32, %c0_i32_0 : i32, i32
  }
  func.func @transform_2(%arg0: i32) -> (i32, i32) {
    %c0_i32 = arith.constant 0 : i32
    %c0_i32_0 = arith.constant 0 : i32
    %c0_i32_1 = arith.constant 0 : i32
    return %c0_i32, %c0_i32_0 : i32, i32
  }
  func.func @transform_3(%arg0: i32) -> (i32, i32) {
    %c0_i32 = arith.constant 0 : i32
    %c0_i32_0 = arith.constant 0 : i32
    %c0_i32_1 = arith.constant 0 : i32
    return %c0_i32, %c0_i32_0 : i32, i32
  }
  func.func @transform_4(%arg0: i32) -> (i32, i32) {
    %c0_i32 = arith.constant 0 : i32
    %c0_i32_0 = arith.constant 0 : i32
    %c0_i32_1 = arith.constant 0 : i32
    return %c0_i32, %c0_i32_0 : i32, i32
  }
  func.func @transform_5(%arg0: i32) -> (i32, i32) {
    %c0_i32 = arith.constant 0 : i32
    %c0_i32_0 = arith.constant 0 : i32
    %c0_i32_1 = arith.constant 0 : i32
    return %c0_i32, %c0_i32_0 : i32, i32
  }
  func.func @transform_6(%arg0: i32) -> (i32, i32) {
    %c0_i32 = arith.constant 0 : i32
    %c0_i32_0 = arith.constant 0 : i32
    %c0_i32_1 = arith.constant 0 : i32
    return %c0_i32, %c0_i32_0 : i32, i32
  }
  func.func @transform_7(%arg0: i32) -> (i32, i32) {
    %c0_i32 = arith.constant 0 : i32
    %c0_i32_0 = arith.constant 0 : i32
    %c0_i32_1 = arith.constant 0 : i32
    return %c0_i32, %c0_i32_0 : i32, i32
  }
  func.func @transform_8(%arg0: i32) -> (i32, i32) {
    %c0_i32 = arith.constant 0 : i32
    %c0_i32_0 = arith.constant 0 : i32
    %c0_i32_1 = arith.constant 0 : i32
    return %c0_i32, %c0_i32_0 : i32, i32
  }
  func.func @transform_9(%arg0: i32) -> (i32, i32) {
    %c0_i32 = arith.constant 0 : i32
    %c0_i32_0 = arith.constant 0 : i32
    %c0_i32_1 = arith.constant 0 : i32
    return %c0_i32, %c0_i32_0 : i32, i32
  }
  func.func @transform_10(%arg0: i32) -> (i32, i32, i32) {
    %c0_i32 = arith.constant 0 : i32
    %c0_i32_0 = arith.constant 0 : i32
    %c0_i32_1 = arith.constant 0 : i32
    return %arg0, %c0_i32, %c0_i32_0 : i32, i32, i32
  }
}

</mosaic_0001>

<bundles_post_ra>
// kernel: tpu_custom_call.1
= control target key start
LH: loop header
LB: loop body
LE: loop exit
PB: predicated region body
PF: predicated region fallthrough
CT: control target
= control target key end

     0   :  { %s1461_s0 = inlined_call_operand.vmem [shape: f32[2,4,256], index: 0, kind: input, shape index: {}]   ;;  %s1462_s1 = inlined_call_operand.vmem [shape: f32[9,256], index: 1, kind: input, shape index: {}]   ;;  %s1463_s2 = inlined_call_operand.hbm [shape: f32[4,9], index: 2, kind: input, shape index: {}]   ;;  %s1464_s3 = inlined_call_operand.hbm [shape: f32[4,9], index: 3, kind: input, shape index: {}]   ;;  %s1465_s4 = inlined_call_operand.vmem [shape: f32[4,1], index: 4, kind: input, shape index: {}]   ;;  %s1466_s5 = inlined_call_operand.vmem [shape: f32[4,1], index: 5, kind: input, shape index: {}]   ;;  %s1467_s6 = inlined_call_operand.vmem [shape: f32[16,4], index: 6, kind: input, shape index: {}]   ;;  %s1468_s7 = inlined_call_operand.vmem [shape: f32[16,1], index: 7, kind: input, shape index: {}]   ;;  %s1469_s8 = inlined_call_operand.vmem [shape: f32[8,8], index: 8, kind: input, shape index: {}]   ;;  %s1470_s9 = inlined_call_operand.vmem [shape: f32[8,1], index: 9, kind: input, shape index: {}]   ;;  %s1471_s10 = inlined_call_operand.hbm [shape: f32[2,8,256], index: 10, kind: output, shape index: {}]  }
   0x1   :  { %1472 = sst [smem:[#allocation11_spill]] %s1463_s2 }
   0x2   :  { %15 = vsyncpa [#allocation3], 0 }
   0x3   :  { %16 = vsyncpa [#allocation6], 0 }
   0x4   :  { %17 = vsyncpa [#allocation4], 0 }
   0x5   :  { %19 = vsyncpa [#allocation4 + $0x1], 0  ;;  %s1227_s13 = smov 0   ;;  %s1229_s14 = smov 0  }
   0x6   :  { %s1231_s15 = smov 0   ;;  %s1233_s16 = smov 0  }
   0x7 LB: > { %s1248_s17 = sadd.s32 4294967295, %s1151_s16   ;;  %s900_s18 = sadd.s32 4294967294, %s1151_s16   ;;  %s1151_s16 = sphi %s1233_s16, %s1480_s16   ;;  %s1147_s15 = sphi %s1231_s15, %s1479_s15   ;;  %s1143_s14 = sphi %s1229_s14, %s1478_s14   ;;  %s1139_s13 = sphi %s1227_s13, %s1477_s13  }
   0x8   : > { %s1252_s19 = sadd.s32 1, %s1151_s16   ;;  %s247_s20 = sadd.s32 1, %s1147_s15 }
   0x9   : > { %s244_s21 = ssub.s32 %s1151_s16, %s1252_s19  ;;  %p257_p0 = scmp.ne.s32.totalorder %s1147_s15, %s1143_s14 }
   0xa   : > { %p245_p1 = scmp.eq.s32.totalorder %s244_s21, 0  ;;  %p258_p2 = scmp.eq.s32.totalorder %s1248_s17, 1 }
   0xb   : > { %p263_p3 = scmp.ne.s32.totalorder %s1143_s14, %s1139_s13  ;;  %p264_p4 = scmp.eq.s32.totalorder %s900_s18, 1 }
   0xc   : > { %s1263_s22 = scalar_select %p245_p1, %s1147_s15, %s247_s20  }
   0xd   : > { %p1265_p5 = por %p258_p2, %p257_p0  ;;  %p1269_p6 = por %p264_p4, %p263_p3 }
   0xe   : > { %p901_p7 = scmp.ge.s32.totalorder %s1151_s16, 1  ;;  %p271_p8 = scmp.lt.s32.totalorder %s1151_s16, 3 }
   0xf   : > { %p951_p9 = scmp.eq.s32.totalorder %s1248_s17, 0  ;;  %s1476_s2 = sld [smem:[#allocation11_spill]] }
  0x10   : > { %p1276_p10 = pnand %p901_p7, %p271_p8  ;;  %s1153_s29 = smov [#allocation2]  }
  0x11   : > { %s288_s30 = sshll.u32 %s1153_s29, 4  ;;  %s298_s18 = sshll.u32 %s1464_s3, 4  ;;  %s289_s30 = int_to_ptr.vmem [resolvable:$true] %s288_s30  ;;  %s299_s18 = int_to_ptr.hbm [resolvable:$true] %s298_s18 }
  0x12   : > { %p940_p11 = pneg %p1276_p10  ;;  %s1154_s20 = smov [#allocation5]  }
  0x13   : > { %s300_s21 = sshll.u32 %s1154_s20, 4  ;;  %339 = sbr.rel (%p1276_p10) target bundleno = 500 (0x1f4), region = 60  ;;  %s301_s21 = int_to_ptr.vmem [resolvable:$true] %s300_s21 }
  0x14   : > { %p941_p12 = pnand %p951_p9, %p940_p11 }
  0x15   : > { %s286_s28 = sshll.u32 %s1476_s2, 4  ;;  %s287_s28 = int_to_ptr.hbm [resolvable:$true] %s286_s28 }
  0x16   : > { %943 = dma.hbm_to_vmem [thread:$0]  (!%p941_p12), %s287_s28, 64, %s289_s30, [#allocation3]  }
  0x17   : > { %946 = dma.hbm_to_vmem [thread:$0]  (!%p941_p12), %s299_s18, 64, %s301_s21, [#allocation6]  }
  0x18   : > { %1126 = dma.done.wait (%p951_p9), [#allocation3], 64  }
  0x19   : > { %1128 = vsyncadd (%p951_p9), [#allocation3], 4294967232 }
  0x1a   : > { %1130 = dma.done.wait (%p951_p9), [#allocation6], 64  }
  0x1b   : > { %1132 = vsyncadd (%p951_p9), [#allocation6], 4294967232  ;;  %v1155_v0 = vmov 0   ;;  %p383_p13 = scmp.lt.s32.totalorder %s1248_s17, 1  ;;  %vm401_vm0 = vcmask 1040384   ;;  %v1319_v4 = vld [vmem:[%s1462_s1] sm:$0xff]  ;;  %v486_v51 = vlaneseq }
  0x1c   : > { %1008 = vset.pattern.permute.xlu1 %v1155_v0  ;;  %1007 = vset.pattern.permute.xlu0 %v1155_v0  ;;  %v395_v1 = vld [vmem:[%s1465_s4] sm:$0xf]  ;;  %v391_v2 = vld [vmem:[%s1462_s1 + $0x10] sm:$0x1]  ;;  %v392_v3 = vld [vmem:[%s1462_s1 + $0x18] sm:$0x1] }
  0x1d   : > { %s384_s25 = scalar_select %p383_p13, %s1248_s17, 1  ;;  %457 = vperm.xlu1 %1008, %v395_v1   ;;  %911 = vmatpush.msk.msra.mxu0 %vm401_vm0, %v391_v2  ;;  %vm397_vm1 = vcmask 72704   ;;  %v1324_v5 = vld [vmem:[%s1462_s1 + $0x8] sm:$0xff]  ;;  %v396_v7 = vld [vmem:[%s1466_s5] sm:$0xf]  ;;  %v1156_v10 = vmov 4  }
  0x1e   : > { %913 = vmatpush.msk.msra.mxu1 %vm401_vm0, %v392_v3  ;;  %v394_v6 = vld [vmem:[#allocation5] sm:$0xf]  ;;  %450 = vperm.xlu0 %1007, %v396_v7   ;;  %v1334_v9 = vld [vmem:[#allocation2] sm:$0xf]  ;;  %v1157_v13 = vmov 1   ;;  %s1158_s2 = smov 17  }
  0x1f   : > { %s928_s26 = sshll.u32 %s384_s25, 3  ;;  %423 = vmatpush.msra.mxu0 %v1319_v4  ;;  %1009 = vset.pattern.permute.xlu2 %v1156_v10  ;;  %v1159_v18 = vmov 2   ;;  %s1160_s30 = smov 16   ;;  %v1162_v21 = vmov 3   ;;  %v1164_v26 = vmov 5   ;;  %v1166_v27 = vmov 8  }
  0x20   : > { %s387_s18 = scalar_lea.vmem %s1461_s0, %s928_s26  ;;  %443 = vmatpush.msra.mxu1 %v1324_v5  ;;  %912 = vmatmul.msk.f32.vlgmr.msra.gmra.mxu0 %vm397_vm1, %v394_v6  ;;  %s1161_s11 = smov 15   ;;  %v1168_v30 = vmov 6   ;;  %v1170_v33 = vmov 7   ;;  %v673_v36 = vld [vmem:[%s1468_s7] sm:$0xff]  ;;  %v1368_v54 = vand.u32 127, %v486_v51  ;;  %v491_v58 = vperm.slane %v1319_v4, 0 }
  0x21   : > { %v1330_v8 = vld [vmem:[%s387_s18] sm:$0xff]  ;;  %914 = vmatmul.msk.f32.vlgmr.msra.gmra.mxu1 %vm397_vm1, %v394_v6  ;;  %464 = vperm.xlu2 %1009, %v1334_v9   ;;  %s1163_s12 = smov 1   ;;  %s1165_s18 = smov 127   ;;  %v492_v59 = vperm.slane %v1324_v5, 0  ;;  %vm692_vm10 = vcmask 1043456   ;;  %vm685_vm11 = vcmask 31744  }
  0x22   : > { %468 = vst [vmem:[#allocation1] ss:$2 sm:$0xff] %v1330_v8  ;;  %s1167_s20 = smov 113   ;;  %s1169_s21 = smov 112   ;;  %vm488_vm2 = vcmp.lt.s32.totalorder %v1368_v54, 17  ;;  %vm512_vm3 = vcmp.lt.s32.totalorder %v1368_v54, 16 }
  0x23   : > { %s1171_s25 = smov 111   ;;  %vm536_vm4 = vcmp.lt.s32.totalorder %v1368_v54, 15  ;;  %vm560_vm5 = vcmp.lt.s32.totalorder %v1368_v54, 1  ;;  %vm584_vm6 = vcmp.lt.s32.totalorder %v1368_v54, 127  ;;  %vm608_vm7 = vcmp.lt.s32.totalorder %v1368_v54, 113 }
  0x24   : > { %vm632_vm8 = vcmp.lt.s32.totalorder %v1368_v54, 112  ;;  %vm656_vm9 = vcmp.lt.s32.totalorder %v1368_v54, 111  ;;  %vm754_vm12 = vcmask 64512  }
  0x25   : > { %496 = vperm.xlu1 %1008, %v1334_v9  }
  0x29   : > { %v1338_v11 = vld.sshfl [vmem:[#allocation1] sm:$0xff pattern:$0x75316420]  ;;  %v1340_v12 = vld.sshfl [vmem:[#allocation1 + $0x8] sm:$0xff pattern:$0x75316420]  ;;  %1016 = vset.pattern.permute.xlu2 %v1166_v27 }
  0x2a   : > { %477 = vst [vmem:[#allocation1] ss:$2 sm:$0xff] %v1330_v8 }
  0x2d   : > { %1010 = vset.pattern.permute.xlu1 %v1157_v13  ;;  %v515_v13 = vperm.slane %v1319_v4, 1 }
  0x2e   : > { %520 = vperm.xlu1 %1010, %v1334_v9  }
  0x31   : > { %v478_v14 = vld.sshfl [vmem:[#allocation1] sm:$0xff pattern:$0x75316420]  ;;  %v479_v15 = vld.sshfl [vmem:[#allocation1 + $0x8] sm:$0xff pattern:$0x75316420] }
  0x32   : > { %482 = vrot.lane.b32.xlu0 %v478_v14, %s1158_s2  ;;  %503 = vst [vmem:[#allocation1] ss:$2 sm:$0xff] %v1330_v8  ;;  %v516_v14 = vperm.slane %v1324_v5, 1 }
  0x36   : > { %484 = vrot.lane.b32.xlu1 %v479_v15, %s1158_s2  ;;  %v539_v15 = vperm.slane %v1319_v4, 2  ;;  %s380_s2 = sand.u32 1, %s1143_s14  }
  0x37   : > { %1011 = vset.pattern.permute.xlu1 %v1159_v18  ;;  %v563_v18 = vperm.slane %v1319_v4, 3 }
  0x39   : > { %v505_v16 = vld.sshfl [vmem:[#allocation1 + $0x8] sm:$0xff pattern:$0x75316420]  ;;  %v504_v17 = vld.sshfl [vmem:[#allocation1] sm:$0xff pattern:$0x75316420] }
  0x3a   : > { %510 = vrot.lane.b32.xlu0 %v505_v16, %s1160_s30  ;;  %527 = vst [vmem:[#allocation1] ss:$2 sm:$0xff] %v1330_v8  ;;  %508 = vrot.lane.b32.xlu2 %v504_v17, %s1160_s30  ;;  %v540_v16 = vperm.slane %v1324_v5, 2  ;;  %s908_s30 = sshll.u32 %s380_s2, 4 }
  0x3e   : > { %544 = vperm.xlu1 %1011, %v1334_v9  }
  0x41   : > { %v528_v19 = vld.sshfl [vmem:[#allocation1] sm:$0xff pattern:$0x75316420]  ;;  %v529_v20 = vld.sshfl [vmem:[#allocation1 + $0x8] sm:$0xff pattern:$0x75316420] }
  0x42   : > { %534 = vrot.lane.b32.xlu0 %v529_v20, %s1161_s11  ;;  %551 = vst [vmem:[#allocation1] ss:$2 sm:$0xff] %v1330_v8  ;;  %532 = vrot.lane.b32.xlu2 %v528_v19, %s1161_s11  ;;  %s929_s11 = sshll.u32 %s1248_s17, 4  ;;  %s803_s17 = scalar_lea.sflag [#allocation4], %s380_s2 }
  0x46   : > { %1012 = vset.pattern.permute.xlu1 %v1162_v21 }
  0x47   : > { %568 = vperm.xlu1 %1012, %v1334_v9  }
  0x49   : > { %v553_v22 = vld.sshfl [vmem:[#allocation1 + $0x8] sm:$0xff pattern:$0x75316420]  ;;  %v552_v23 = vld.sshfl [vmem:[#allocation1] sm:$0xff pattern:$0x75316420] }
  0x4a   : > { %558 = vrot.lane.b32.xlu0 %v553_v22, %s1163_s12  ;;  %575 = vst [vmem:[#allocation1] ss:$2 sm:$0xff] %v1330_v8  ;;  %556 = vrot.lane.b32.xlu2 %v552_v23, %s1163_s12 }
  0x4f   : > { %1013 = vset.pattern.permute.xlu1 %v1164_v26 }
  0x50   : > { %592 = vperm.xlu1 %1013, %v1334_v9  }
  0x51   : > { %v577_v24 = vld.sshfl [vmem:[#allocation1 + $0x8] sm:$0xff pattern:$0x75316420]  ;;  %v576_v25 = vld.sshfl [vmem:[#allocation1] sm:$0xff pattern:$0x75316420] }
  0x52   : > { %582 = vrot.lane.b32.xlu0 %v577_v24, %s1165_s18  ;;  %599 = vst [vmem:[#allocation1] ss:$2 sm:$0xff] %v1330_v8  ;;  %580 = vrot.lane.b32.xlu2 %v576_v25, %s1165_s18  ;;  %v564_v25 = vperm.slane %v1324_v5, 3 }
  0x58   : > { %1014 = vset.pattern.permute.xlu1 %v1168_v30 }
  0x59   : > { %v601_v28 = vld.sshfl [vmem:[#allocation1 + $0x8] sm:$0xff pattern:$0x75316420]  ;;  %v600_v29 = vld.sshfl [vmem:[#allocation1] sm:$0xff pattern:$0x75316420]  ;;  %616 = vperm.xlu1 %1014, %v1334_v9  }
  0x5a   : > { %606 = vrot.lane.b32.xlu0 %v601_v28, %s1167_s20  ;;  %623 = vst [vmem:[#allocation1] ss:$2 sm:$0xff] %v1330_v8  ;;  %604 = vrot.lane.b32.xlu2 %v600_v29, %s1167_s20  ;;  %s814_s20 = scalar_lea.hbm %s1471_s10, %s929_s11 }
  0x5b   : > { %s818_s27 = sshll.u32 %s814_s20, 4  ;;  %s819_s27 = int_to_ptr.hbm [resolvable:$true] %s818_s27 }
  0x5c   : > { %s1095_s28 = sshra.s32 %s819_s27, 4  ;;  %s1096_s28 = int_to_ptr.hbm [resolvable:$true] %s1095_s28 }
  0x5d   : > { %s1097_s26 = scalar_lea.hbm %s1096_s28, 16  ;;  %p1102_p3 = scmp.lt.s32.totalorder %s1096_s28, %s1471_s10 }
  0x5e   : > { %p1098_p0 = scmp.ne.s32.totalorder %s1096_s28, %s1097_s26 }
  0x60   : > { %p1099_p1 = pnand %p1098_p0, %p1265_p5 }
  0x61   : > { %v624_v31 = vld.sshfl [vmem:[#allocation1] sm:$0xff pattern:$0x75316420]  ;;  %v625_v32 = vld.sshfl [vmem:[#allocation1 + $0x8] sm:$0xff pattern:$0x75316420]  ;;  %1015 = vset.pattern.permute.xlu1 %v1170_v33 }
  0x62   : > { %630 = vrot.lane.b32.xlu0 %v625_v32, %s1169_s21  ;;  %647 = vst [vmem:[#allocation1] ss:$2 sm:$0xff] %v1330_v8  ;;  %628 = vrot.lane.b32.xlu2 %v624_v31, %s1169_s21  ;;  %v587_v32 = vperm.slane %v1319_v4, 5  ;;  %s382_s21 = scalar_lea.vmem [#allocation7], %s908_s30  ;;  %p1100_p2 = pneg %p1099_p1 }
  0x63   : > { %640 = vperm.xlu1 %1015, %v1334_v9   ;;  %s1101_s30 = scalar_lea.hbm %s1471_s10, 32 }
  0x64   : > { %p1103_p4 = scmp.lt.s32.totalorder %s1101_s30, %s1097_s26 }
  0x66   : > { %p1104_p7 = por %p1103_p4, %p1102_p3 }
  0x68   : > { %p1105_p8 = pnand %p1104_p7, %p1100_p2 }
  0x69   : > { %v649_v34 = vld.sshfl [vmem:[#allocation1 + $0x8] sm:$0xff pattern:$0x75316420]  ;;  %v648_v35 = vld.sshfl [vmem:[#allocation1] sm:$0xff pattern:$0x75316420] }
  0x6a   : > { %654 = vrot.lane.b32.xlu0 %v649_v34, %s1171_s25  ;;  %652 = vrot.lane.b32.xlu2 %v648_v35, %s1171_s25  ;;  %s816_s25 = sshll.u32 %s382_s21, 4  ;;  %s817_s25 = int_to_ptr.vmem [resolvable:$true] %s816_s25 }
  0x6b   : > { %1017 = vset.pattern.permute.xlu1 %v1155_v0 }
  0x72   : > { %677 = vperm.xlu0 %1007, %v673_v36   ;;  %664 = vperm.xlu2 %1016, %v1334_v9   ;;  %v588_v36 = vperm.slane %v1324_v5, 5 }
  0x7a   : > { %1018 = vset.pattern.permute.xlu2 %v1155_v0 }
  0x7b   : > { %v465_v37 = vpop.permute.xlu2 %464 }
  0x7c   : > { %v473_v2 = vmul.f32 %v1338_v11, %v465_v37  ;;  %v474_v7 = vmul.f32 %v1340_v12, %v465_v37 }
  0x8f   : > { %v458_v38 = vpop.permute.xlu1 %457 }
  0x90   : > { %v451_v41 = vpop.permute.xlu0 %450 }
  0x94   : > { %v509_v39 = vpop.permute.xlu2 %508 }
  0x97   : > { %v497_v40 = vpop.permute.xlu1 %496 }
  0x9c   : > { %v533_v42 = vpop.permute.xlu2 %532 }
  0x9d   : > { %v425_v56 = vpop.f32.mrf.mxu0 }
  0x9e   : > { %v445_v57 = vpop.f32.mrf.mxu1  ;;  %v453_v61 = vmul.f32 %v451_v41, %v425_v56 }
  0x9f   : > { %v454_v62 = vmul.f32 %v451_v41, %v445_v57 }
  0xa0   : > { %v1362_v43 = vpop.permute.xlu1 %520  ;;  %v460_v8 = vadd.f32 %v458_v38, %v453_v61 }
  0xa1   : > { %v461_v9 = vadd.f32 %v458_v38, %v454_v62 }
  0xa2   : > { %v475_v23 = vadd.f32 %v473_v2, %v460_v8 }
  0xa3   : > { %v476_v24 = vadd.f32 %v474_v7, %v461_v9 }
  0xa4   : > { %v483_v44 = vpop.permute.xlu0 %482  ;;  %v557_v46 = vpop.permute.xlu2 %556 }
  0xa8   : > { %v485_v45 = vpop.permute.xlu1 %484 }
  0xa9   : > { %v489_v63 = vsel %vm488_vm2, %v483_v44, %v485_v45  ;;  %v490_v0 = vsel %vm488_vm2, %v485_v45, %v483_v44  ;;  %v611_v44 = vperm.slane %v1319_v4, 6  ;;  %v612_v45 = vperm.slane %v1324_v5, 6 }
  0xaa   : > { %v493_v3 = vmul.f32 %v491_v58, %v490_v0  ;;  %v494_v6 = vmul.f32 %v492_v59, %v489_v63  ;;  %v635_v63 = vperm.slane %v1319_v4, 7  ;;  %v1020_v4 = vld [vmem:[%s1462_s1 + $0x18] ss:$0 sm:$0xff] }
  0xac   : > { %v511_v47 = vpop.permute.xlu0 %510  ;;  %v581_v50 = vpop.permute.xlu2 %580  ;;  %v499_v12 = vmul.f32 %v497_v40, %v493_v3  ;;  %v500_v19 = vmul.f32 %v497_v40, %v494_v6 }
  0xad   : > { %v513_v11 = vsel %vm512_vm3, %v509_v39, %v511_v47  ;;  %v514_v17 = vsel %vm512_vm3, %v511_v47, %v509_v39 }
  0xae   : > { %v517_v26 = vmul.f32 %v515_v13, %v514_v17  ;;  %v518_v27 = vmul.f32 %v516_v14, %v513_v11  ;;  %v501_v34 = vadd.f32 %v499_v12, %v475_v23  ;;  %v502_v35 = vadd.f32 %v500_v19, %v476_v24 }
  0xb0   : > { %v1364_v48 = vpop.permute.xlu1 %544  ;;  %v523_v41 = vmul.f32 %v1362_v43, %v517_v26 }
  0xb2   : > { %v525_v58 = vadd.f32 %v523_v41, %v501_v34  ;;  %v747_v41 = vld [vmem:[%s1469_s8] sm:$0xff] }
  0xb4   : > { %v535_v49 = vpop.permute.xlu0 %534  ;;  %v605_v55 = vpop.permute.xlu2 %604 }
  0xb5   : > { %v537_v20 = vsel %vm536_vm4, %v533_v42, %v535_v49  ;;  %v538_v21 = vsel %vm536_vm4, %v535_v49, %v533_v42  ;;  %v524_v42 = vmul.f32 %v1362_v43, %v518_v27 }
  0xb6   : > { %v541_v30 = vmul.f32 %v539_v15, %v538_v21  ;;  %v542_v31 = vmul.f32 %v540_v16, %v537_v20 }
  0xb7   : > { %v526_v59 = vadd.f32 %v524_v42, %v502_v35 }
  0xb8   : > { %v548_v47 = vmul.f32 %v1364_v48, %v542_v31  ;;  %v672_v31 = vld [vmem:[%s1467_s6 + $0x8] sm:$0xff] }
  0xb9   : > { %v1366_v52 = vpop.permute.xlu1 %568 }
  0xbc   : > { %v559_v53 = vpop.permute.xlu0 %558  ;;  %v629_v10 = vpop.permute.xlu2 %628 }
  0xbd   : > { %v561_v28 = vsel %vm560_vm5, %v557_v46, %v559_v53  ;;  %v562_v29 = vsel %vm560_vm5, %v559_v53, %v557_v46  ;;  %v547_v46 = vmul.f32 %v1364_v48, %v541_v30  ;;  %v636_v48 = vperm.slane %v1324_v5, 7  ;;  %v671_v30 = vld [vmem:[%s1467_s6] sm:$0xff] }
  0xbe   : > { %v565_v37 = vmul.f32 %v563_v18, %v562_v29  ;;  %v566_v38 = vmul.f32 %v564_v25, %v561_v28 }
  0xbf   : > { %v549_v0 = vadd.f32 %v547_v46, %v525_v58 }
  0xc0   : > { %v571_v43 = vmul.f32 %v1366_v52, %v565_v37 }
  0xc2   : > { %v1373_v1 = vpop.permute.xlu1 %592  ;;  %v573_v8 = vadd.f32 %v571_v43, %v549_v0 }
  0xc4   : > { %v583_v60 = vpop.permute.xlu0 %582  ;;  %v653_v53 = vpop.permute.xlu2 %652 }
  0xc5   : > { %v585_v39 = vsel %vm584_vm6, %v581_v50, %v583_v60  ;;  %v586_v40 = vsel %vm584_vm6, %v583_v60, %v581_v50  ;;  %v572_v60 = vmul.f32 %v1366_v52, %v566_v38  ;;  %v1019_v52 = vld [vmem:[%s1462_s1 + $0x10] ss:$0 sm:$0xff] }
  0xc6   : > { %v589_v56 = vmul.f32 %v587_v32, %v585_v39  ;;  %v590_v57 = vmul.f32 %v588_v36, %v586_v40  ;;  %v674_v32 = vld [vmem:[%s1468_s7 + $0x8] sm:$0xff] }
  0xc7   : > { %682 = vperm.xlu1 %1017, %v674_v32  }
  0xc8   : > { %v595_v6 = vmul.f32 %v1373_v1, %v589_v56  ;;  %v596_v7 = vmul.f32 %v1373_v1, %v590_v57 }
  0xca   : > { %v597_v16 = vadd.f32 %v595_v6, %v573_v8 }
  0xcb   : > { %v617_v33 = vpop.permute.xlu1 %616 }
  0xcc   : > { %v607_v22 = vpop.permute.xlu0 %606  ;;  %v665_v54 = vpop.permute.xlu2 %664 }
  0xcd   : > { %v609_v49 = vsel %vm608_vm7, %v605_v55, %v607_v22  ;;  %v610_v51 = vsel %vm608_vm7, %v607_v22, %v605_v55  ;;  %v550_v55 = vadd.f32 %v548_v47, %v526_v59 }
  0xce   : > { %v613_v61 = vmul.f32 %v611_v44, %v609_v49  ;;  %v614_v62 = vmul.f32 %v612_v45, %v610_v51 }
  0xcf   : > { %v574_v9 = vadd.f32 %v572_v60, %v550_v55 }
  0xd0   : > { %v619_v5 = vmul.f32 %v617_v33, %v613_v61  ;;  %v620_v14 = vmul.f32 %v617_v33, %v614_v62  ;;  %v748_v33 = vld [vmem:[%s1470_s9] sm:$0xff] }
  0xd1   : > { %v598_v11 = vadd.f32 %v596_v7, %v574_v9  ;;  %751 = vperm.xlu2 %1018, %v748_v33  }
  0xd2   : > { %v621_v20 = vadd.f32 %v619_v5, %v597_v16 }
  0xd3   : > { %v622_v21 = vadd.f32 %v620_v14, %v598_v11 }
  0xd4   : > { %v631_v50 = vpop.permute.xlu0 %630 }
  0xd5   : > { %v633_v2 = vsel %vm632_vm8, %v629_v10, %v631_v50  ;;  %v634_v3 = vsel %vm632_vm8, %v631_v50, %v629_v10  ;;  %v641_v13 = vpop.permute.xlu1 %640 }
  0xd6   : > { %v637_v10 = vmul.f32 %v635_v63, %v633_v2  ;;  %v638_v15 = vmul.f32 %v636_v48, %v634_v3 }
  0xd8   : > { %v643_v1 = vmul.f32 %v641_v13, %v637_v10  ;;  %v644_v17 = vmul.f32 %v641_v13, %v638_v15 }
  0xda   : > { %v645_v26 = vadd.f32 %v643_v1, %v621_v20  ;;  %v646_v27 = vadd.f32 %v644_v17, %v622_v21 }
  0xdc   : > { %v655_v18 = vpop.permute.xlu0 %654 }
  0xdd   : > { %v657_v12 = vsel %vm656_vm9, %v653_v53, %v655_v18  ;;  %v658_v19 = vsel %vm656_vm9, %v655_v18, %v653_v53 }
  0xde   : > { %v661_v22 = vmul.f32 %v1019_v52, %v657_v12  ;;  %v662_v23 = vmul.f32 %v1020_v4, %v658_v19 }
  0xe0   : > { %v667_v24 = vmul.f32 %v665_v54, %v661_v22  ;;  %v668_v25 = vmul.f32 %v665_v54, %v662_v23 }
  0xe2   : > { %v669_v28 = vadd.f32 %v667_v24, %v645_v26  ;;  %v670_v29 = vadd.f32 %v668_v25, %v646_v27 }
  0xe4   : > { %915 = vmatpush.msk.msra.mxu2 %vm692_vm10, %v669_v28  ;;  %918 = vmatpush.msk.msra.mxu3 %vm692_vm10, %v670_v29  ;;  %v678_v34 = vpop.permute.xlu0 %677 }
  0xe5   : > { %916 = vmatmul.msk.f32.vlgmr.msra.gmra.mxu2 %vm685_vm11, %v671_v30  ;;  %919 = vmatmul.msk.f32.vlgmr.msra.gmra.mxu3 %vm685_vm11, %v671_v30 }
  0xed   : > { %917 = vmatmul.msk.f32.gmra.mxu2 %vm685_vm11, %v672_v31  ;;  %920 = vmatmul.msk.f32.gmra.mxu3 %vm685_vm11, %v672_v31 }
 0x12b   : > { %v752_v46 = vpop.permute.xlu2 %751 }
 0x139   : > { %v683_v42 = vpop.permute.xlu1 %682 }
 0x168   : > { %v716_v35 = vpop.f32.mrf.mxu2  ;;  %v739_v36 = vpop.f32.mrf.mxu3 }
 0x169   : > { %v717_v37 = vadd.f32 %v716_v35, %v678_v34  ;;  %v740_v38 = vadd.f32 %v739_v36, %v678_v34 }
 0x16b   : > { %v745_v39 = vmax.f32 %v717_v37, 0.0  ;;  %v746_v40 = vmax.f32 %v740_v38, 0.0 }
 0x16d   : > { %773 = vmatpush.msrb.mxu0 %v745_v39  ;;  %793 = vmatpush.msrb.mxu1 %v746_v40 }
 0x16e   : > { %921 = vmatmul.msk.f32.vlgmr.msrb.gmra.mxu0 %vm754_vm12, %v747_v41  ;;  %922 = vmatmul.msk.f32.vlgmr.msrb.gmra.mxu1 %vm754_vm12, %v747_v41 }
 0x170   : > { %v742_v44 = vpop.f32.mrf.mxu3  ;;  %v719_v45 = vpop.f32.mrf.mxu2 }
 0x171   : > { %v743_v47 = vadd.f32 %v742_v44, %v683_v42  ;;  %v720_v49 = vadd.f32 %v719_v45, %v683_v42 }
 0x1eb   : > { %v795_v51 = vpop.f32.mrf.mxu1  ;;  %v775_v53 = vpop.f32.mrf.mxu0 }
 0x1ec   : > { %v796_v56 = vadd.f32 %v795_v51, %v752_v46  ;;  %v776_v57 = vadd.f32 %v775_v53, %v752_v46 }
 0x1ee   : > { %v799_v50 = vadd.f32 %v796_v56, %v743_v47  ;;  %v798_v58 = vadd.f32 %v776_v57, %v720_v49 }
 0x1f0   : > { %801 = vst [vmem:[%s382_s21 + $0x8] sm:$0xff] %v799_v50 }
 0x1f1   : > { %800 = vst [vmem:[%s382_s21] sm:$0xff] %v798_v58 }
 0x1f2   : > { %1108 = shalt.err (!%p1105_p8)
}
 0x1f3   : > { %938 = dma.vmem_to_hbm [thread:$0]  (%p1265_p5), %s817_s25, 256, %s819_s27, %s803_s17  }
 0x1f4 PF: > { %p955_p9 = scmp.ge.s32.totalorder %s1151_s16, 2  ;;  %s830_s2 = sand.u32 1, %s1139_s13  }
 0x1f5   : > { %s831_s20 = scalar_lea.sflag [#allocation4], %s830_s2 }
 0x1f6   : > { %p948_p10 = pnand %p955_p9, %p1269_p6 }
 0x1f8   : > { %p949_p11 = pneg %p948_p10 }
 0x1fa   : > { %1134 = dma.done.wait (%p949_p11), %s831_s20, 256  }
 0x1fb   : > { %1136 = vsyncadd (%p949_p11), %s831_s20, 4294967040  ;;  %p22_p12 = scmp.ge.s32.totalorder %s1252_s19, 4   ;;  %s1477_s13 = smov %s1143_s14 }
 0x1fc   : > { %s1478_s14 = smov %s1147_s15  ;;  %s1479_s15 = smov %s1263_s22 }
 0x1fd   : > { %s1480_s16 = smov %s1252_s19  ;;  %24 = sbr.rel (!%p22_p12) target bundleno = 7 (0x7), region = 104 }
 0x202   :  { %837 = vsyncpa [#allocation3], 1 }
 0x203   :  { %839 = vsyncpa [#allocation3 + $0x1], 1 }
 0x204   :  { %840 = vsyncpa [#allocation6], 1 }
 0x205   :  { %841 = vsyncpa [#allocation4], 1 }
 0x206   :  { %843 = vsyncpa [#allocation4 + $0x1], 1 }

</bundles_post_ra>
